<compile_context>
chip_gen: v6e
topology: v6e:2x2x1
jax: 0.10.0
libtpu: 0.0.40
codegen_flags: <defaults>
</compile_context>

<pallas_src>
import math

import jax
import jax.numpy as jnp
from jax.experimental import pallas as pl
from jax.experimental.pallas import tpu as pltpu

_LANE = 128           # TPU lane width
_MAX_TM = 1024        # largest batch tile ever used
_HEADROOM = 4 << 20   # headroom left for compiler-internal scratch


# ---------------------------------------------------------------------------
# kernels
# ---------------------------------------------------------------------------
def _linear_kernel(x_ref, w_ref, b_ref, o_ref):
    # x_ref: (TM, F) streamed; w_ref: (F, C_pad) resident; b_ref: (1, C_pad) f32.
    # o_ref: (TM, C) -- only the real classes are written back to HBM.
    acc = jnp.dot(x_ref[...], w_ref[...], preferred_element_type=jnp.float32)
    acc = acc + b_ref[...]
    o_ref[...] = acc[:, : o_ref.shape[-1]].astype(o_ref.dtype)


def _linear_kernel_ksplit(x_ref, w_ref, b_ref, o_ref, acc_ref):
    # Large-F path: trailing K (feature) reduction axis + f32 VMEM accumulator.
    k = pl.program_id(1)

    @pl.when(k == 0)
    def _():
        acc_ref[...] = jnp.zeros_like(acc_ref)

    acc_ref[...] += jnp.dot(x_ref[...], w_ref[...],
                            preferred_element_type=jnp.float32)

    @pl.when(k == pl.num_programs(1) - 1)
    def _():
        acc = acc_ref[...] + b_ref[...]
        o_ref[...] = acc[:, : o_ref.shape[-1]].astype(o_ref.dtype)


# ---------------------------------------------------------------------------
# sizing helpers
# ---------------------------------------------------------------------------
def _usable_vmem_bytes():
    """Generation-aware usable VMEM: ~112 MiB on v5e/v6e, ~48 MiB on v7x."""
    try:
        cap = int(pltpu.get_tpu_info().vmem_capacity_bytes)
    except Exception:  # conservative fallback if the query is unavailable
        cap = 64 << 20
    return max(cap - (16 << 20), 32 << 20)


def _sublane_granularity(dtype):
    # Second-minor block-dim granularity: f32 -> 8, bf16 -> 16, int8/fp8 -> 32.
    return 8 * max(1, 4 // jnp.dtype(dtype).itemsize)


def _pick_tm(batch, gran, fits):
    """Largest batch tile that fits VMEM, preferring one that divides `batch`."""
    if batch <= _MAX_TM and fits(batch):
        return batch, False                      # one tile covers the whole batch
    hi = min(_MAX_TM, max((batch // gran) * gran, gran))
    fitting = [t for t in range(hi, gran - 1, -gran) if fits(t)]
    if not fitting:
        return gran, (batch % gran != 0)
    best = fitting[0]
    div = next((t for t in fitting if batch % t == 0), None)
    if div is not None and 2 * div >= best:      # divisor near-best: avoid padding
        return div, False
    return best, (batch % best != 0)


# ---------------------------------------------------------------------------
# params prep (one-time) + forward
# ---------------------------------------------------------------------------
def prepare_linear_params(weight, bias):
    """One-time prep of nn.Linear params.

    weight (C, F) -> (F, C_pad): lane-padded, pre-transposed RHS for the MXU.
    bias   (C,)   -> (1, C_pad) float32 (added to the f32 accumulator).
    """
    n_classes, n_features = weight.shape
    c_pad = pl.cdiv(max(n_classes, _LANE), _LANE) * _LANE
    w_t = jnp.zeros((n_features, c_pad), dtype=weight.dtype)
    w_t = w_t.at[:, :n_classes].set(weight.T)
    b_row = jnp.zeros((1, c_pad), dtype=jnp.float32)
    b_row = b_row.at[0, :n_classes].set(bias.astype(jnp.float32))
    return w_t, b_row, n_classes


def logistic_regression_forward(x, w_t, b_row, n_classes):
    """x: (B, F); w_t: (F, C_pad); b_row: (1, C_pad) f32. Returns (B, n_classes)."""
    B, F = x.shape
    c_pad = w_t.shape[1]
    assert w_t.shape[0] == F and b_row.shape == (1, c_pad)

    x_item = jnp.dtype(x.dtype).itemsize
    w_item = jnp.dtype(w_t.dtype).itemsize
    out_item = x_item
    gran = _sublane_granularity(x.dtype)
    vmem_cap = _usable_vmem_bytes()
    budget = vmem_cap - _HEADROOM

    resident = F * c_pad * w_item + c_pad * 4        # whole weight + bias in VMEM

    def fits_single(tm):
        return (2 * tm * F * x_item                  # x tiles, double-buffered
                + 2 * tm * c_pad * out_item          # out tiles (lane-padded in VMEM)
                + resident) <= budget

    tm, need_pad = _pick_tm(B, gran, fits_single)
    tk = F

    if not fits_single(tm):
        # Large-F / small-VMEM (v7x) guard: stream the weight over a trailing
        # "arbitrary" K-reduction axis with an f32 accumulator (P3 pattern).
        tk_opts = [t for t in (8192, 4096, 2048, 1024, 512, 256, 128) if F % t == 0]
        # TODO(synk): if F has no multiple-of-128 divisor the kernel falls back
        # to single-shot F and extreme F may exceed the VMEM budget.
        if tk_opts:
            def make_fits(tk_):
                def fits(tm_):
                    return (2 * tm_ * tk_ * x_item       # x tiles
                            + 2 * tk_ * c_pad * w_item   # weight K-blocks
                            + tm_ * c_pad * 4            # f32 accumulator
                            + 2 * tm_ * c_pad * out_item
                            + c_pad * 4) <= budget
                return fits
            tk = next((t for t in tk_opts if make_fits(t)(gran)), tk_opts[-1])
            tm, need_pad = _pick_tm(B, gran, make_fits(tk))

    b_padded = pl.cdiv(B, tm) * tm if need_pad else B
    if need_pad:
        # Rare fallback (no suitable batch-tile divisor); one extra pass over x.
        x = jnp.pad(x, ((0, b_padded - B), (0, 0)))
    n_m = b_padded // tm

    if tk == F:
        kernel = _linear_kernel
        grid = (n_m,)
        in_specs = [
            pl.BlockSpec((tm, F), lambda i: (i, 0)),        # stream x tiles
            pl.BlockSpec((F, c_pad), lambda i: (0, 0)),     # resident weight
            pl.BlockSpec((1, c_pad), lambda i: (0, 0)),     # resident bias
        ]
        out_specs = pl.BlockSpec((tm, n_classes), lambda i: (i, 0))
        scratch_shapes = []
        dim_semantics = ("parallel",)
        footprint = 2 * tm * F * x_item + 2 * tm * c_pad * out_item + resident
    else:
        kernel = _linear_kernel_ksplit
        grid = (n_m, F // tk)
        in_specs = [
            pl.BlockSpec((tm, tk), lambda i, k: (i, k)),
            pl.BlockSpec((tk, c_pad), lambda i, k: (k, 0)),
            pl.BlockSpec((1, c_pad), lambda i, k: (0, 0)),
        ]
        out_specs = pl.BlockSpec((tm, n_classes), lambda i, k: (i, 0))
        scratch_shapes = [pltpu.VMEM((tm, c_pad), jnp.float32)]
        dim_semantics = ("parallel", "arbitrary")
        footprint = (2 * tm * tk * x_item + 2 * tk * c_pad * w_item
                     + tm * c_pad * 4 + 2 * tm * c_pad * out_item + c_pad * 4)

    vmem_limit = int(max(32 << 20, min(footprint + _HEADROOM, vmem_cap)))

    out = pl.pallas_call(
        kernel,
        out_shape=jax.ShapeDtypeStruct((b_padded, n_classes), x.dtype),
        grid=grid,
        in_specs=in_specs,
        out_specs=out_specs,
        scratch_shapes=scratch_shapes,
        compiler_params=pltpu.CompilerParams(
            dimension_semantics=dim_semantics,
            vmem_limit_bytes=vmem_limit),
        cost_estimate=pl.CostEstimate(
            flops=2 * b_padded * F * c_pad,
            bytes_accessed=(x_item * b_padded * F
                            + out_item * b_padded * n_classes
                            + w_item * F * c_pad + 4 * c_pad),
            transcendentals=0),
    )(x, w_t, b_row)

    return out[:B] if need_pad else out


def make_logistic_regression(weight, bias):
    """Mirror of the PyTorch module: params are prepped once, forward(x) after."""
    w_t, b_row, n_classes = prepare_linear_params(weight, bias)

    def forward(x):
        return logistic_regression_forward(x, w_t, b_row, n_classes)

    return forward


def init_linear_params(key, n_classes, n_features, dtype=jnp.float32):
    """Deterministic init matching nn.Linear's default U(-1/sqrt(F), 1/sqrt(F))."""
    kw, kb = jax.random.split(key)
    bound = 1.0 / math.sqrt(n_features)
    weight = jax.random.uniform(
        kw, (n_classes, n_features), dtype=dtype, minval=-bound, maxval=bound)
    bias = jax.random.uniform(
        kb, (n_classes,), dtype=dtype, minval=-bound, maxval=bound)
    return weight, bias


if __name__ == "__main__":
    key = jax.random.PRNGKey(0)
    k_x, k_p = jax.random.split(key)

    batch = 2048          # exercises the multi-tile batch grid (tm=1024 -> 2 steps)
    n_features = 128
    n_classes = 4

    x = jax.random.normal(k_x, (batch, n_features), dtype=jnp.float32)
    weight, bias = init_linear_params(k_p, n_classes, n_features)

    forward = make_logistic_regression(weight, bias)   # one-time param prep
    out = jax.block_until_ready(forward(x))

    # sanity check against plain-JAX reference (PyTorch semantics: x @ W.T + b)
    ref = x @ weight.T + bias
    assert out.shape == (batch, n_classes)
    assert jnp.allclose(out, ref, atol=2e-5, rtol=2e-5)

    print("KERNEL_OK")
</pallas_src>

<mosaic_0001>
module attributes {stable_mosaic.version = 11 : i64} {
  func.func @_linear_kernel(%arg0: i32, %arg1: memref<1024x128xf32, #tpu.memory_space<vmem>>, %arg2: memref<128x128xf32, #tpu.memory_space<vmem>>, %arg3: memref<1x128xf32, #tpu.memory_space<vmem>>, %arg4: memref<1024x4xf32, #tpu.memory_space<vmem>>) attributes {dimension_semantics = [#tpu.dimension_semantics<parallel>], iteration_bounds = array<i64: 2>, scalar_prefetch = 0 : i64, scratch_operands = 0 : i64, tpu.core_type = #tpu.core_type<tc>, window_params = [{transform_indices = @transform_0, window_bounds = array<i64: 1024, 128>}, {pipeline_mode = #tpu.pipeline_mode<synchronous>, transform_indices = @transform_1, window_bounds = array<i64: 128, 128>}, {pipeline_mode = #tpu.pipeline_mode<synchronous>, transform_indices = @transform_2, window_bounds = array<i64: 1, 128>}, {transform_indices = @transform_3, window_bounds = array<i64: 1024, 4>}]} {
    %c0 = arith.constant 0 : index
    %c0_0 = arith.constant 0 : index
    %0 = vector.load %arg1[%c0, %c0_0] : memref<1024x128xf32, #tpu.memory_space<vmem>>, vector<1024x128xf32>
    %c0_1 = arith.constant 0 : index
    %c0_2 = arith.constant 0 : index
    %1 = vector.load %arg2[%c0_1, %c0_2] : memref<128x128xf32, #tpu.memory_space<vmem>>, vector<128x128xf32>
    %cst = arith.constant dense<0.000000e+00> : vector<1024x128xf32>
    %2 = tpu.matmul %0, %1, %cst {dimension_numbers = #tpu.dot_dimension_numbers<[1], [0], [0], [1], [0, 0, 1, 1], [], []>} : vector<1024x128xf32>, vector<128x128xf32>, vector<1024x128xf32> -> vector<1024x128xf32>
    %c0_3 = arith.constant 0 : index
    %c0_4 = arith.constant 0 : index
    %3 = vector.load %arg3[%c0_3, %c0_4] : memref<1x128xf32, #tpu.memory_space<vmem>>, vector<1x128xf32>
    %4 = vector.broadcast %3 : vector<1x128xf32> to vector<1024x128xf32>
    %5 = arith.addf %2, %4 : vector<1024x128xf32>
    %6 = vector.extract_strided_slice %5 {offsets = [0, 0], sizes = [1024, 4], strides = [1, 1]} : vector<1024x128xf32> to vector<1024x4xf32>
    %c0_5 = arith.constant 0 : index
    %c0_6 = arith.constant 0 : index
    %7 = vector.load %arg4[%c0_5, %c0_6] : memref<1024x4xf32, #tpu.memory_space<vmem>>, vector<1024x4xf32>
    tpu.vector_store %arg4[%c0_5, %c0_6], %6 {strides = array<i32>} : memref<1024x4xf32, #tpu.memory_space<vmem>>, vector<1024x4xf32>,
    return
  }
  func.func @transform_0(%arg0: i32) -> (i32, i32) {
    %c0_i32 = arith.constant 0 : i32
    %c0_i32_0 = arith.constant 0 : i32
    return %arg0, %c0_i32 : i32, i32
  }
  func.func @transform_1(%arg0: i32) -> (i32, i32) {
    %c0_i32 = arith.constant 0 : i32
    %c0_i32_0 = arith.constant 0 : i32
    %c0_i32_1 = arith.constant 0 : i32
    return %c0_i32, %c0_i32_0 : i32, i32
  }
  func.func @transform_2(%arg0: i32) -> (i32, i32) {
    %c0_i32 = arith.constant 0 : i32
    %c0_i32_0 = arith.constant 0 : i32
    %c0_i32_1 = arith.constant 0 : i32
    return %c0_i32, %c0_i32_0 : i32, i32
  }
  func.func @transform_3(%arg0: i32) -> (i32, i32) {
    %c0_i32 = arith.constant 0 : i32
    %c0_i32_0 = arith.constant 0 : i32
    return %arg0, %c0_i32 : i32, i32
  }
}

</mosaic_0001>

<bundles_post_ra>
// kernel: tpu_custom_call.1
= control target key start
LH: loop header
LB: loop body
LE: loop exit
PB: predicated region body
PF: predicated region fallthrough
CT: control target
= control target key end

     0   :  { %8 = vsyncpa [#allocation3], 0  ;;  %s2513_s0 = inlined_call_operand.hbm [shape: f32[2048,128], index: 0, kind: input, shape index: {}]   ;;  %s2514_s1 = inlined_call_operand.hbm [shape: f32[128,128], index: 1, kind: input, shape index: {}]   ;;  %s2515_s2 = inlined_call_operand.vmem [shape: f32[1,128], index: 2, kind: input, shape index: {}]   ;;  %s2516_s3 = inlined_call_operand.vmem [shape: f32[2048,4], index: 3, kind: output, shape index: {}]  }
   0x1   :  { %10 = vsyncpa [#allocation3 + $0x1], 0 }
   0x2   :  { %11 = vsyncpa [#allocation5], 0  ;;  %s1857_s12 = smov 0   ;;  %s1859_s13 = smov 0  }
   0x3   :  { %s1861_s14 = smov 0   ;;  %s1863_s15 = smov 0  }
   0x4 LB: > { %s1270_s16 = sadd.s32 4294967295, %s1831_s15   ;;  %p37_p0 = scmp.ne.s32.totalorder %s1823_s13, %s1819_s12  ;;  %s1831_s15 = sphi %s1863_s15, %s2532_s15   ;;  %s1827_s14 = sphi %s1861_s14, %s2531_s14   ;;  %s1823_s13 = sphi %s1859_s13, %s2530_s13   ;;  %s1819_s12 = sphi %s1857_s12, %s2529_s12  }
   0x5   : > { %p1879_p1 = scmp.eq.s32.totalorder %s1270_s16, 0  ;;  %p1272_p2 = scmp.ge.s32.totalorder %s1831_s15, 1 }
   0x6   : > { %p116_p3 = scmp.lt.s32.totalorder %s1831_s15, 3  ;;  %s1833_s20 = smov [#allocation4]  }
   0x7   : > { %s2521_s17 = scalar_select %p1879_p1, 1, 0 }
   0x8   : > { %p1887_p4 = por %p1879_p1, %p37_p0  ;;  %p1891_p5 = pnand %p1272_p2, %p116_p3 }
   0x9   : > { %s128_s21 = sshll.u32 %s1833_s20, 4  ;;  %s1904_s23 = sadd.s32 1, %s1831_s15   ;;  %s129_s21 = int_to_ptr.vmem [resolvable:$true] %s128_s21 }
   0xa   : > { %s2522_s18 = scalar_select %p1887_p4, 1, 0 }
   0xb   : > { %s2523_s19 = scalar_select %p1891_p5, 1, 0 }
   0xc   : > { %p1693_p6 = pneg %p1891_p5  ;;  %s24_s24 = sadd.s32 1, %s1827_s14 }
   0xd   : > { %s21_s25 = ssub.s32 %s1831_s15, %s1904_s23  ;;  %s1750_s26 = scalar_lea.vmem %s129_s21, 2048 }
   0xe   : > { %p1899_p7 = pnand %p1693_p6, %p1879_p1  ;;  %p1751_p9 = scmp.ne.s32.totalorder %s129_s21, %s1750_s26 }
   0xf   : > { %p1758_p12 = scmp.lt.s32.totalorder %s129_s21, %s129_s21  ;;  %p1759_p13 = scmp.lt.s32.totalorder %s1750_s26, %s1750_s26 }
  0x10   : > { %p1741_p8 = pneg %p1899_p7 }
  0x11   : > { %p1760_p0 = por %p1759_p13, %p1758_p12 }
  0x12   : > { %p1753_p10 = pnand %p1751_p9, %p1741_p8 }
  0x14   : > { %p1754_p11 = pneg %p1753_p10 }
  0x16   : > { %p1761_p2 = pnand %p1760_p0, %p1754_p11 }
  0x18   : > { %1764 = shalt.err (!%p1761_p2)
}
  0x19   : > { %s1834_s27 = smov 128   ;;  %s1835_s28 = smov 8  }
  0x1a   : > { %1696 = dma.hbm_to_vmem [thread:$0]  (!%p1899_p7), %s2514_s1, 2048, %s129_s21, [#allocation5], %s1834_s27, %s1834_s27, %s1835_s28  }
  0x1b   : > { %p22_p3 = scmp.eq.s32.totalorder %s21_s25, 0  ;;  %p31_p6 = scmp.ne.s32.totalorder %s1827_s14, %s1823_s13 }
  0x1c   : > { %p32_p8 = scmp.eq.s32.totalorder %s1831_s15, 0  ;;  %p1702_p9 = scmp.lt.s32.totalorder %s1831_s15, 2 }
  0x1d   : > { %s1924_s4 = scalar_select %p22_p3, %s1827_s14, %s24_s24  }
  0x1e   : > { %p33_p10 = por %p32_p8, %p31_p6  ;;  %s145_s5 = sand.u32 1, %s1827_s14  }
  0x1f   : > { %s1275_s6 = sshll.u32 %s145_s5, 10  ;;  %s1286_s7 = sshll.u32 %s1831_s15, 14 }
  0x20   : > { %s1931_s10 = scalar_lea.hbm %s2513_s0, %s1286_s7  ;;  %s149_s11 = scalar_lea.vmem [#allocation2], %s1275_s6 }
  0x21   : > { %s156_s12 = sshll.u32 %s149_s11, 4  ;;  %p1935_p7 = pnand %p1702_p9, %p33_p10  ;;  %s1933_s12 = int_to_ptr.vmem [resolvable:$true] %s156_s12 }
  0x22   : > { %s1939_s21 = scalar_lea.sflag [#allocation3], %s145_s5  ;;  %s1765_s22 = scalar_lea.hbm %s1931_s10, 16384 }
  0x23   : > { %p1766_p11 = scmp.ne.s32.totalorder %s1931_s10, %s1765_s22  ;;  %p1767_p12 = pneg %p1935_p7 }
  0x24   : > { %s1770_s26 = scalar_lea.hbm %s2513_s0, 32768  ;;  %p1771_p2 = scmp.lt.s32.totalorder %s1931_s10, %s2513_s0 }
  0x25   : > { %p1768_p13 = pnand %p1767_p12, %p1766_p11  ;;  %p1772_p3 = scmp.lt.s32.totalorder %s1770_s26, %s1765_s22 }
  0x27   : > { %p1769_p0 = pneg %p1768_p13  ;;  %p1773_p6 = por %p1772_p3, %p1771_p2 }
  0x29   : > { %p1774_p8 = pnand %p1773_p6, %p1769_p0 }
  0x2b   : > { %1777 = shalt.err (!%p1774_p8)
}
  0x2c   : > { %s1778_s5 = scalar_lea.vmem %s1933_s12, 16384  ;;  %s1836_s6 = smov [#allocation2]  }
  0x2d   : > { %p1779_p9 = scmp.ne.s32.totalorder %s1933_s12, %s1778_s5  ;;  %s1783_s7 = sshll.u32 %s1836_s6, 4  ;;  %s1784_s7 = int_to_ptr.vmem [resolvable:$false] %s1783_s7 }
  0x2e   : > { %s1785_s8 = scalar_lea.vmem %s1784_s7, 32768  ;;  %p1786_p13 = scmp.lt.s32.totalorder %s1933_s12, %s1784_s7 }
  0x2f   : > { %p1781_p10 = pnand %p1779_p9, %p1767_p12  ;;  %p1787_p1 = scmp.lt.s32.totalorder %s1785_s8, %s1778_s5 }
  0x31   : > { %p1782_p11 = pneg %p1781_p10  ;;  %p1788_p4 = por %p1787_p1, %p1786_p13 }
  0x33   : > { %p1789_p5 = pnand %p1788_p4, %p1782_p11 }
  0x35   : > { %1792 = shalt.err (!%p1789_p5)
}
  0x36   : > { %1700 = dma.hbm_to_vmem [thread:$0]  (!%p1935_p7), %s1931_s10, 16384, %s1933_s12, %s1939_s21, %s1834_s27, %s1834_s27, %s1835_s28  }
  0x37   : > { %p2526_p12 = scmp.ne.s32.totalorder %s2523_s19, 0 }
  0x38   : > { %s170_s9 = sand.u32 (!%p2526_p12), 1, %s1823_s13   ;;  %p2527_p1 = scmp.ne.s32.totalorder (!%p2526_p12), %s2522_s18, 0 }
  0x39   : > { %168 = sbr.rel (%p2526_p12) target bundleno = 422 (0x1a6), region = 32  ;;  %s1279_s11 = sshll.u32 (!%p2526_p12), %s170_s9, 10 }
  0x3a   : > { %s171_s22 = scalar_lea.sflag (!%p2526_p12), [#allocation3], %s170_s9  ;;  %s1966_s24 = scalar_lea.vmem (!%p2526_p12), [#allocation2], %s1279_s11 }
  0x3e   : > { %1810 = dma.done.wait (%p2527_p1), %s171_s22, 16384  }
  0x3f   : > { %1812 = vsyncadd (%p2527_p1), %s171_s22, 4294950912  ;;  %p2528_p4 = scmp.ne.s32.totalorder %s2521_s17, 0 }
  0x41   : > { %1814 = dma.done.wait (%p2528_p4), [#allocation5], 2048  }
  0x42   : > { %1816 = vsyncadd (%p2528_p4), [#allocation5], 4294965248  ;;  %v351_v0 = vld [vmem:[#allocation4 + $0x78] sm:$0xff]  ;;  %v350_v1 = vld [vmem:[#allocation4 + $0x70] sm:$0xff]  ;;  %s1281_s17 = sshll.u32 %s1270_s16, 7  ;;  %vm1064_vm0 = vcmask 31744  }
  0x43   : > { %1431 = vmatprep.subr.mxu0 %v351_v0  ;;  %1655 = vmatprep.subr.mxu1 %v351_v0  ;;  %v349_v2 = vld [vmem:[#allocation4 + $0x68] sm:$0xff]  ;;  %v348_v3 = vld [vmem:[#allocation4 + $0x60] sm:$0xff]  ;;  %v347_v4 = vld [vmem:[#allocation4 + $0x58] sm:$0xff]  ;;  %p203_p5 = scmp.lt.s32.totalorder %s1281_s17, 255 }
  0x44   : > { %1432 = vmatpush3.msra.mxu0 %v351_v0  ;;  %1671 = vmatpush3.msra.mxu1 %v351_v0  ;;  %v346_v5 = vld [vmem:[#allocation4 + $0x50] sm:$0xff]  ;;  %v345_v6 = vld [vmem:[#allocation4 + $0x48] sm:$0xff]  ;;  %v344_v7 = vld [vmem:[#allocation4 + $0x40] sm:$0xff] }
  0x45   : > { %1433 = vmatprep.subr.mxu0 %v350_v1  ;;  %1656 = vmatprep.subr.mxu1 %v350_v1  ;;  %v343_v8 = vld [vmem:[#allocation4 + $0x38] sm:$0xff]  ;;  %v342_v9 = vld [vmem:[#allocation4 + $0x30] sm:$0xff]  ;;  %v341_v10 = vld [vmem:[#allocation4 + $0x28] sm:$0xff]  ;;  %s2534_s17 = smov (!%p203_p5, %s1281_s17), 255 }
  0x46   : > { %1434 = vmatpush3.msra.mxu0 %v350_v1  ;;  %1672 = vmatpush3.msra.mxu1 %v350_v1  ;;  %v340_v11 = vld [vmem:[#allocation4 + $0x20] sm:$0xff]  ;;  %v339_v12 = vld [vmem:[#allocation4 + $0x18] sm:$0xff]  ;;  %v338_v13 = vld [vmem:[#allocation4 + $0x10] sm:$0xff]  ;;  %s1282_s18 = sshll.u32 %s2534_s17, 3 }
  0x47   : > { %1435 = vmatprep.subr.mxu0 %v349_v2  ;;  %1657 = vmatprep.subr.mxu1 %v349_v2  ;;  %v337_v14 = vld [vmem:[#allocation4 + $0x8] sm:$0xff]  ;;  %v336_v15 = vld [vmem:[#allocation4] sm:$0xff]  ;;  %v210_v20 = vld [vmem:[%s1966_s24 + $0x10] sm:$0xff]  ;;  %s2114_s12 = scalar_lea.vmem %s2516_s3, %s1282_s18 }
  0x48   : > { %1436 = vmatpush3.msra.mxu0 %v349_v2  ;;  %1673 = vmatpush3.msra.mxu1 %v349_v2  ;;  %v208_v16 = vld [vmem:[%s1966_s24] sm:$0xff]  ;;  %v209_v18 = vld [vmem:[%s1966_s24 + $0x8] sm:$0xff]  ;;  %v274_v21 = vld [vmem:[%s1966_s24 + $0x210] sm:$0xff] }
  0x49   : > { %1437 = vmatprep.subr.mxu0 %v348_v3  ;;  %1658 = vmatprep.subr.mxu1 %v348_v3  ;;  %v272_v17 = vld [vmem:[%s1966_s24 + $0x200] sm:$0xff]  ;;  %v273_v19 = vld [vmem:[%s1966_s24 + $0x208] sm:$0xff]  ;;  %v211_v22 = vld [vmem:[%s1966_s24 + $0x18] sm:$0xff] }
  0x4a   : > { %1438 = vmatpush3.msra.mxu0 %v348_v3  ;;  %1674 = vmatpush3.msra.mxu1 %v348_v3  ;;  %v275_v23 = vld [vmem:[%s1966_s24 + $0x218] sm:$0xff]  ;;  %v212_v24 = vld [vmem:[%s1966_s24 + $0x20] sm:$0xff]  ;;  %v213_v26 = vld [vmem:[%s1966_s24 + $0x28] sm:$0xff] }
  0x4b   : > { %1439 = vmatprep.subr.mxu0 %v347_v4  ;;  %1659 = vmatprep.subr.mxu1 %v347_v4  ;;  %v276_v25 = vld [vmem:[%s1966_s24 + $0x220] sm:$0xff]  ;;  %v277_v27 = vld [vmem:[%s1966_s24 + $0x228] sm:$0xff]  ;;  %v214_v28 = vld [vmem:[%s1966_s24 + $0x30] sm:$0xff] }
  0x4c   : > { %1440 = vmatpush3.msra.mxu0 %v347_v4  ;;  %1675 = vmatpush3.msra.mxu1 %v347_v4  ;;  %v278_v29 = vld [vmem:[%s1966_s24 + $0x230] sm:$0xff]  ;;  %v215_v30 = vld [vmem:[%s1966_s24 + $0x38] sm:$0xff]  ;;  %v216_v32 = vld [vmem:[%s1966_s24 + $0x40] sm:$0xff] }
  0x4d   : > { %1441 = vmatprep.subr.mxu0 %v346_v5  ;;  %1660 = vmatprep.subr.mxu1 %v346_v5  ;;  %v279_v31 = vld [vmem:[%s1966_s24 + $0x238] sm:$0xff]  ;;  %v280_v33 = vld [vmem:[%s1966_s24 + $0x240] sm:$0xff]  ;;  %v217_v34 = vld [vmem:[%s1966_s24 + $0x48] sm:$0xff] }
  0x4e   : > { %1442 = vmatpush3.msra.mxu0 %v346_v5  ;;  %1676 = vmatpush3.msra.mxu1 %v346_v5  ;;  %v281_v35 = vld [vmem:[%s1966_s24 + $0x248] sm:$0xff]  ;;  %v218_v36 = vld [vmem:[%s1966_s24 + $0x50] sm:$0xff]  ;;  %v219_v38 = vld [vmem:[%s1966_s24 + $0x58] sm:$0xff] }
  0x4f   : > { %1443 = vmatprep.subr.mxu0 %v345_v6  ;;  %1661 = vmatprep.subr.mxu1 %v345_v6  ;;  %v282_v37 = vld [vmem:[%s1966_s24 + $0x250] sm:$0xff]  ;;  %v283_v39 = vld [vmem:[%s1966_s24 + $0x258] sm:$0xff]  ;;  %v220_v40 = vld [vmem:[%s1966_s24 + $0x60] sm:$0xff] }
  0x50   : > { %1444 = vmatpush3.msra.mxu0 %v345_v6  ;;  %1677 = vmatpush3.msra.mxu1 %v345_v6  ;;  %v284_v41 = vld [vmem:[%s1966_s24 + $0x260] sm:$0xff]  ;;  %v221_v42 = vld [vmem:[%s1966_s24 + $0x68] sm:$0xff]  ;;  %v222_v44 = vld [vmem:[%s1966_s24 + $0x70] sm:$0xff] }
  0x51   : > { %1445 = vmatprep.subr.mxu0 %v344_v7  ;;  %1662 = vmatprep.subr.mxu1 %v344_v7  ;;  %v285_v43 = vld [vmem:[%s1966_s24 + $0x268] sm:$0xff]  ;;  %v286_v45 = vld [vmem:[%s1966_s24 + $0x270] sm:$0xff]  ;;  %v223_v46 = vld [vmem:[%s1966_s24 + $0x78] sm:$0xff] }
  0x52   : > { %1446 = vmatpush3.msra.mxu0 %v344_v7  ;;  %1678 = vmatpush3.msra.mxu1 %v344_v7  ;;  %v287_v47 = vld [vmem:[%s1966_s24 + $0x278] sm:$0xff]  ;;  %v224_v48 = vld [vmem:[%s1966_s24 + $0x80] sm:$0xff]  ;;  %v225_v50 = vld [vmem:[%s1966_s24 + $0x88] sm:$0xff] }
  0x53   : > { %1447 = vmatprep.subr.mxu0 %v343_v8  ;;  %1663 = vmatprep.subr.mxu1 %v343_v8  ;;  %v288_v49 = vld [vmem:[%s1966_s24 + $0x280] sm:$0xff]  ;;  %v289_v51 = vld [vmem:[%s1966_s24 + $0x288] sm:$0xff]  ;;  %v226_v52 = vld [vmem:[%s1966_s24 + $0x90] sm:$0xff] }
  0x54   : > { %1448 = vmatpush3.msra.mxu0 %v343_v8  ;;  %1679 = vmatpush3.msra.mxu1 %v343_v8  ;;  %v290_v53 = vld [vmem:[%s1966_s24 + $0x290] sm:$0xff]  ;;  %v227_v54 = vld [vmem:[%s1966_s24 + $0x98] sm:$0xff]  ;;  %v228_v56 = vld [vmem:[%s1966_s24 + $0xa0] sm:$0xff] }
  0x55   : > { %1449 = vmatprep.subr.mxu0 %v342_v9  ;;  %1664 = vmatprep.subr.mxu1 %v342_v9  ;;  %v291_v55 = vld [vmem:[%s1966_s24 + $0x298] sm:$0xff]  ;;  %v292_v57 = vld [vmem:[%s1966_s24 + $0x2a0] sm:$0xff]  ;;  %v229_v58 = vld [vmem:[%s1966_s24 + $0xa8] sm:$0xff] }
  0x56   : > { %1450 = vmatpush3.msra.mxu0 %v342_v9  ;;  %1680 = vmatpush3.msra.mxu1 %v342_v9  ;;  %v293_v59 = vld [vmem:[%s1966_s24 + $0x2a8] sm:$0xff]  ;;  %v230_v60 = vld [vmem:[%s1966_s24 + $0xb0] sm:$0xff]  ;;  %v231_v62 = vld [vmem:[%s1966_s24 + $0xb8] sm:$0xff] }
  0x57   : > { %1451 = vmatprep.subr.mxu0 %v341_v10  ;;  %1665 = vmatprep.subr.mxu1 %v341_v10  ;;  %v294_v61 = vld [vmem:[%s1966_s24 + $0x2b0] sm:$0xff]  ;;  %v295_v63 = vld [vmem:[%s1966_s24 + $0x2b8] sm:$0xff]  ;;  %v232_v0 = vld [vmem:[%s1966_s24 + $0xc0] sm:$0xff] }
  0x58   : > { %1452 = vmatpush3.msra.mxu0 %v341_v10  ;;  %1681 = vmatpush3.msra.mxu1 %v341_v10  ;;  %v296_v1 = vld [vmem:[%s1966_s24 + $0x2c0] sm:$0xff]  ;;  %v233_v2 = vld [vmem:[%s1966_s24 + $0xc8] sm:$0xff]  ;;  %v234_v4 = vld [vmem:[%s1966_s24 + $0xd0] sm:$0xff] }
  0x59   : > { %1453 = vmatprep.subr.mxu0 %v340_v11  ;;  %1666 = vmatprep.subr.mxu1 %v340_v11  ;;  %v297_v3 = vld [vmem:[%s1966_s24 + $0x2c8] sm:$0xff]  ;;  %v298_v5 = vld [vmem:[%s1966_s24 + $0x2d0] sm:$0xff]  ;;  %v235_v6 = vld [vmem:[%s1966_s24 + $0xd8] sm:$0xff] }
  0x5a   : > { %1454 = vmatpush3.msra.mxu0 %v340_v11  ;;  %1682 = vmatpush3.msra.mxu1 %v340_v11  ;;  %v299_v7 = vld [vmem:[%s1966_s24 + $0x2d8] sm:$0xff]  ;;  %v236_v8 = vld [vmem:[%s1966_s24 + $0xe0] sm:$0xff]  ;;  %v237_v10 = vld [vmem:[%s1966_s24 + $0xe8] sm:$0xff] }
  0x5b   : > { %1455 = vmatprep.subr.mxu0 %v339_v12  ;;  %1667 = vmatprep.subr.mxu1 %v339_v12  ;;  %v300_v9 = vld [vmem:[%s1966_s24 + $0x2e0] sm:$0xff]  ;;  %v301_v11 = vld [vmem:[%s1966_s24 + $0x2e8] sm:$0xff] }
  0x5c   : > { %1456 = vmatpush3.msra.mxu0 %v339_v12  ;;  %1683 = vmatpush3.msra.mxu1 %v339_v12  ;;  %v238_v12 = vld [vmem:[%s1966_s24 + $0xf0] sm:$0xff] }
  0x5d   : > { %1457 = vmatprep.subr.mxu0 %v338_v13  ;;  %1668 = vmatprep.subr.mxu1 %v338_v13 }
  0x5e   : > { %1458 = vmatpush3.msra.mxu0 %v338_v13  ;;  %1684 = vmatpush3.msra.mxu1 %v338_v13  ;;  %v302_v13 = vld [vmem:[%s1966_s24 + $0x2f0] sm:$0xff] }
  0x5f   : > { %1459 = vmatprep.subr.mxu0 %v337_v14  ;;  %1669 = vmatprep.subr.mxu1 %v337_v14 }
  0x60   : > { %1460 = vmatpush3.msra.mxu0 %v337_v14  ;;  %1685 = vmatpush3.msra.mxu1 %v337_v14  ;;  %v239_v14 = vld [vmem:[%s1966_s24 + $0xf8] sm:$0xff] }
  0x61   : > { %1461 = vmatprep.subr.mxu0 %v336_v15  ;;  %1670 = vmatprep.subr.mxu1 %v336_v15 }
  0x62   : > { %1462 = vmatpush3.msra.mxu0 %v336_v15  ;;  %1686 = vmatpush3.msra.mxu1 %v336_v15  ;;  %v303_v15 = vld [vmem:[%s1966_s24 + $0x2f8] sm:$0xff] }
  0x63   : > { %1463 = vmatprep.mubr.f32.mxu0 %v208_v16  ;;  %1559 = vmatprep.mubr.f32.mxu1 %v272_v17  ;;  %v240_v16 = vld [vmem:[%s1966_s24 + $0x100] sm:$0xff] }
  0x64   : > { %1464 = vmatmul.mubr.f32.vlgmr.msra.gmra.mxu0 %v209_v18  ;;  %1560 = vmatmul.mubr.f32.vlgmr.msra.gmra.mxu1 %v273_v19  ;;  %v304_v17 = vld [vmem:[%s1966_s24 + $0x300] sm:$0xff]  ;;  %v241_v18 = vld [vmem:[%s1966_s24 + $0x108] sm:$0xff] }
  0x65   : > { %1466 = vmatprep.mubr.f32.mxu0 %v210_v20  ;;  %1562 = vmatprep.mubr.f32.mxu1 %v274_v21  ;;  %v305_v19 = vld [vmem:[%s1966_s24 + $0x308] sm:$0xff]  ;;  %v242_v20 = vld [vmem:[%s1966_s24 + $0x110] sm:$0xff] }
  0x66   : > { %v306_v21 = vld [vmem:[%s1966_s24 + $0x310] sm:$0xff] }
  0x68   : > { %1467 = vmatmul.mubr.f32.gmra.mxu0 %v211_v22  ;;  %1563 = vmatmul.mubr.f32.gmra.mxu1 %v275_v23  ;;  %v243_v22 = vld [vmem:[%s1966_s24 + $0x118] sm:$0xff] }
  0x69   : > { %1469 = vmatprep.mubr.f32.mxu0 %v212_v24  ;;  %1565 = vmatprep.mubr.f32.mxu1 %v276_v25  ;;  %v307_v23 = vld [vmem:[%s1966_s24 + $0x318] sm:$0xff]  ;;  %v244_v24 = vld [vmem:[%s1966_s24 + $0x120] sm:$0xff] }
  0x6a   : > { %v308_v25 = vld [vmem:[%s1966_s24 + $0x320] sm:$0xff] }
  0x6c   : > { %1470 = vmatmul.mubr.f32.gmra.mxu0 %v213_v26  ;;  %1566 = vmatmul.mubr.f32.gmra.mxu1 %v277_v27  ;;  %v245_v26 = vld [vmem:[%s1966_s24 + $0x128] sm:$0xff] }
  0x6d   : > { %1472 = vmatprep.mubr.f32.mxu0 %v214_v28  ;;  %1568 = vmatprep.mubr.f32.mxu1 %v278_v29  ;;  %v309_v27 = vld [vmem:[%s1966_s24 + $0x328] sm:$0xff]  ;;  %v246_v28 = vld [vmem:[%s1966_s24 + $0x130] sm:$0xff] }
  0x6e   : > { %v310_v29 = vld [vmem:[%s1966_s24 + $0x330] sm:$0xff] }
  0x70   : > { %1473 = vmatmul.mubr.f32.gmra.mxu0 %v215_v30  ;;  %1569 = vmatmul.mubr.f32.gmra.mxu1 %v279_v31  ;;  %v247_v30 = vld [vmem:[%s1966_s24 + $0x138] sm:$0xff] }
  0x71   : > { %1475 = vmatprep.mubr.f32.mxu0 %v216_v32  ;;  %1571 = vmatprep.mubr.f32.mxu1 %v280_v33  ;;  %v311_v31 = vld [vmem:[%s1966_s24 + $0x338] sm:$0xff]  ;;  %v248_v32 = vld [vmem:[%s1966_s24 + $0x140] sm:$0xff] }
  0x72   : > { %v312_v33 = vld [vmem:[%s1966_s24 + $0x340] sm:$0xff] }
  0x74   : > { %1476 = vmatmul.mubr.f32.gmra.mxu0 %v217_v34  ;;  %1572 = vmatmul.mubr.f32.gmra.mxu1 %v281_v35  ;;  %v249_v34 = vld [vmem:[%s1966_s24 + $0x148] sm:$0xff] }
  0x75   : > { %1478 = vmatprep.mubr.f32.mxu0 %v218_v36  ;;  %1574 = vmatprep.mubr.f32.mxu1 %v282_v37  ;;  %v313_v35 = vld [vmem:[%s1966_s24 + $0x348] sm:$0xff]  ;;  %v250_v36 = vld [vmem:[%s1966_s24 + $0x150] sm:$0xff] }
  0x76   : > { %v314_v37 = vld [vmem:[%s1966_s24 + $0x350] sm:$0xff] }
  0x78   : > { %1479 = vmatmul.mubr.f32.gmra.mxu0 %v219_v38  ;;  %1575 = vmatmul.mubr.f32.gmra.mxu1 %v283_v39  ;;  %v251_v38 = vld [vmem:[%s1966_s24 + $0x158] sm:$0xff] }
  0x79   : > { %1481 = vmatprep.mubr.f32.mxu0 %v220_v40  ;;  %1577 = vmatprep.mubr.f32.mxu1 %v284_v41  ;;  %v315_v39 = vld [vmem:[%s1966_s24 + $0x358] sm:$0xff]  ;;  %v252_v40 = vld [vmem:[%s1966_s24 + $0x160] sm:$0xff] }
  0x7a   : > { %v316_v41 = vld [vmem:[%s1966_s24 + $0x360] sm:$0xff] }
  0x7c   : > { %1482 = vmatmul.mubr.f32.gmra.mxu0 %v221_v42  ;;  %1578 = vmatmul.mubr.f32.gmra.mxu1 %v285_v43  ;;  %v253_v42 = vld [vmem:[%s1966_s24 + $0x168] sm:$0xff] }
  0x7d   : > { %1484 = vmatprep.mubr.f32.mxu0 %v222_v44  ;;  %1580 = vmatprep.mubr.f32.mxu1 %v286_v45  ;;  %v317_v43 = vld [vmem:[%s1966_s24 + $0x368] sm:$0xff]  ;;  %v254_v44 = vld [vmem:[%s1966_s24 + $0x170] sm:$0xff] }
  0x7e   : > { %v318_v45 = vld [vmem:[%s1966_s24 + $0x370] sm:$0xff] }
  0x80   : > { %1485 = vmatmul.mubr.f32.gmra.mxu0 %v223_v46  ;;  %1581 = vmatmul.mubr.f32.gmra.mxu1 %v287_v47  ;;  %v255_v46 = vld [vmem:[%s1966_s24 + $0x178] sm:$0xff] }
  0x81   : > { %1487 = vmatprep.mubr.f32.mxu0 %v224_v48  ;;  %1583 = vmatprep.mubr.f32.mxu1 %v288_v49  ;;  %v319_v47 = vld [vmem:[%s1966_s24 + $0x378] sm:$0xff]  ;;  %v256_v48 = vld [vmem:[%s1966_s24 + $0x180] sm:$0xff] }
  0x82   : > { %v320_v49 = vld [vmem:[%s1966_s24 + $0x380] sm:$0xff] }
  0x84   : > { %1488 = vmatmul.mubr.f32.gmra.mxu0 %v225_v50  ;;  %1584 = vmatmul.mubr.f32.gmra.mxu1 %v289_v51  ;;  %v257_v50 = vld [vmem:[%s1966_s24 + $0x188] sm:$0xff] }
  0x85   : > { %1490 = vmatprep.mubr.f32.mxu0 %v226_v52  ;;  %1586 = vmatprep.mubr.f32.mxu1 %v290_v53  ;;  %v321_v51 = vld [vmem:[%s1966_s24 + $0x388] sm:$0xff]  ;;  %v258_v52 = vld [vmem:[%s1966_s24 + $0x190] sm:$0xff] }
  0x86   : > { %v322_v53 = vld [vmem:[%s1966_s24 + $0x390] sm:$0xff] }
  0x88   : > { %1491 = vmatmul.mubr.f32.gmra.mxu0 %v227_v54  ;;  %1587 = vmatmul.mubr.f32.gmra.mxu1 %v291_v55  ;;  %v259_v54 = vld [vmem:[%s1966_s24 + $0x198] sm:$0xff] }
  0x89   : > { %1493 = vmatprep.mubr.f32.mxu0 %v228_v56  ;;  %1589 = vmatprep.mubr.f32.mxu1 %v292_v57  ;;  %v323_v55 = vld [vmem:[%s1966_s24 + $0x398] sm:$0xff]  ;;  %v260_v56 = vld [vmem:[%s1966_s24 + $0x1a0] sm:$0xff] }
  0x8a   : > { %v324_v57 = vld [vmem:[%s1966_s24 + $0x3a0] sm:$0xff] }
  0x8c   : > { %1494 = vmatmul.mubr.f32.gmra.mxu0 %v229_v58  ;;  %1590 = vmatmul.mubr.f32.gmra.mxu1 %v293_v59  ;;  %v261_v58 = vld [vmem:[%s1966_s24 + $0x1a8] sm:$0xff] }
  0x8d   : > { %1496 = vmatprep.mubr.f32.mxu0 %v230_v60  ;;  %1592 = vmatprep.mubr.f32.mxu1 %v294_v61  ;;  %v325_v59 = vld [vmem:[%s1966_s24 + $0x3a8] sm:$0xff]  ;;  %v262_v60 = vld [vmem:[%s1966_s24 + $0x1b0] sm:$0xff] }
  0x8e   : > { %v326_v61 = vld [vmem:[%s1966_s24 + $0x3b0] sm:$0xff] }
  0x90   : > { %1497 = vmatmul.mubr.f32.gmra.mxu0 %v231_v62  ;;  %1593 = vmatmul.mubr.f32.gmra.mxu1 %v295_v63  ;;  %v263_v62 = vld [vmem:[%s1966_s24 + $0x1b8] sm:$0xff] }
  0x91   : > { %1499 = vmatprep.mubr.f32.mxu0 %v232_v0  ;;  %1595 = vmatprep.mubr.f32.mxu1 %v296_v1  ;;  %v327_v63 = vld [vmem:[%s1966_s24 + $0x3b8] sm:$0xff]  ;;  %v264_v0 = vld [vmem:[%s1966_s24 + $0x1c0] sm:$0xff] }
  0x92   : > { %v328_v1 = vld [vmem:[%s1966_s24 + $0x3c0] sm:$0xff] }
  0x94   : > { %1500 = vmatmul.mubr.f32.gmra.mxu0 %v233_v2  ;;  %1596 = vmatmul.mubr.f32.gmra.mxu1 %v297_v3  ;;  %v265_v2 = vld [vmem:[%s1966_s24 + $0x1c8] sm:$0xff] }
  0x95   : > { %1502 = vmatprep.mubr.f32.mxu0 %v234_v4  ;;  %1598 = vmatprep.mubr.f32.mxu1 %v298_v5  ;;  %v329_v3 = vld [vmem:[%s1966_s24 + $0x3c8] sm:$0xff]  ;;  %v266_v4 = vld [vmem:[%s1966_s24 + $0x1d0] sm:$0xff] }
  0x96   : > { %v330_v5 = vld [vmem:[%s1966_s24 + $0x3d0] sm:$0xff] }
  0x98   : > { %1503 = vmatmul.mubr.f32.gmra.mxu0 %v235_v6  ;;  %1599 = vmatmul.mubr.f32.gmra.mxu1 %v299_v7  ;;  %v267_v6 = vld [vmem:[%s1966_s24 + $0x1d8] sm:$0xff] }
  0x99   : > { %1505 = vmatprep.mubr.f32.mxu0 %v236_v8  ;;  %1601 = vmatprep.mubr.f32.mxu1 %v300_v9  ;;  %v331_v7 = vld [vmem:[%s1966_s24 + $0x3d8] sm:$0xff]  ;;  %v268_v8 = vld [vmem:[%s1966_s24 + $0x1e0] sm:$0xff] }
  0x9a   : > { %v332_v9 = vld [vmem:[%s1966_s24 + $0x3e0] sm:$0xff] }
  0x9c   : > { %1506 = vmatmul.mubr.f32.gmra.mxu0 %v237_v10  ;;  %1602 = vmatmul.mubr.f32.gmra.mxu1 %v301_v11  ;;  %v269_v10 = vld [vmem:[%s1966_s24 + $0x1e8] sm:$0xff] }
  0x9d   : > { %1508 = vmatprep.mubr.f32.mxu0 %v238_v12  ;;  %1604 = vmatprep.mubr.f32.mxu1 %v302_v13  ;;  %v333_v11 = vld [vmem:[%s1966_s24 + $0x3e8] sm:$0xff]  ;;  %v270_v12 = vld [vmem:[%s1966_s24 + $0x1f0] sm:$0xff] }
  0x9e   : > { %v334_v13 = vld [vmem:[%s1966_s24 + $0x3f0] sm:$0xff] }
  0xa0   : > { %1509 = vmatmul.mubr.f32.gmra.mxu0 %v239_v14  ;;  %1605 = vmatmul.mubr.f32.gmra.mxu1 %v303_v15  ;;  %v271_v14 = vld [vmem:[%s1966_s24 + $0x1f8] sm:$0xff] }
  0xa1   : > { %1511 = vmatprep.mubr.f32.mxu0 %v240_v16  ;;  %1607 = vmatprep.mubr.f32.mxu1 %v304_v17  ;;  %v335_v15 = vld [vmem:[%s1966_s24 + $0x3f8] sm:$0xff]  ;;  %v2109_v16 = vld [vmem:[%s2515_s2] ss:$0 sm:$0xff] }
  0xa4   : > { %1512 = vmatmul.mubr.f32.gmra.mxu0 %v241_v18  ;;  %1608 = vmatmul.mubr.f32.gmra.mxu1 %v305_v19 }
  0xa5   : > { %1514 = vmatprep.mubr.f32.mxu0 %v242_v20  ;;  %1610 = vmatprep.mubr.f32.mxu1 %v306_v21 }
  0xa8   : > { %1515 = vmatmul.mubr.f32.gmra.mxu0 %v243_v22  ;;  %1611 = vmatmul.mubr.f32.gmra.mxu1 %v307_v23 }
  0xa9   : > { %1517 = vmatprep.mubr.f32.mxu0 %v244_v24  ;;  %1613 = vmatprep.mubr.f32.mxu1 %v308_v25 }
  0xac   : > { %1518 = vmatmul.mubr.f32.gmra.mxu0 %v245_v26  ;;  %1614 = vmatmul.mubr.f32.gmra.mxu1 %v309_v27 }
  0xad   : > { %1520 = vmatprep.mubr.f32.mxu0 %v246_v28  ;;  %1616 = vmatprep.mubr.f32.mxu1 %v310_v29 }
  0xb0   : > { %1521 = vmatmul.mubr.f32.gmra.mxu0 %v247_v30  ;;  %1617 = vmatmul.mubr.f32.gmra.mxu1 %v311_v31 }
  0xb1   : > { %1523 = vmatprep.mubr.f32.mxu0 %v248_v32  ;;  %1619 = vmatprep.mubr.f32.mxu1 %v312_v33 }
  0xb4   : > { %1524 = vmatmul.mubr.f32.gmra.mxu0 %v249_v34  ;;  %1620 = vmatmul.mubr.f32.gmra.mxu1 %v313_v35 }
  0xb5   : > { %1526 = vmatprep.mubr.f32.mxu0 %v250_v36  ;;  %1622 = vmatprep.mubr.f32.mxu1 %v314_v37 }
  0xb8   : > { %1527 = vmatmul.mubr.f32.gmra.mxu0 %v251_v38  ;;  %1623 = vmatmul.mubr.f32.gmra.mxu1 %v315_v39 }
  0xb9   : > { %1529 = vmatprep.mubr.f32.mxu0 %v252_v40  ;;  %1625 = vmatprep.mubr.f32.mxu1 %v316_v41 }
  0xbc   : > { %1530 = vmatmul.mubr.f32.gmra.mxu0 %v253_v42  ;;  %1626 = vmatmul.mubr.f32.gmra.mxu1 %v317_v43 }
  0xbd   : > { %1532 = vmatprep.mubr.f32.mxu0 %v254_v44  ;;  %1628 = vmatprep.mubr.f32.mxu1 %v318_v45 }
  0xc0   : > { %1533 = vmatmul.mubr.f32.gmra.mxu0 %v255_v46  ;;  %1629 = vmatmul.mubr.f32.gmra.mxu1 %v319_v47 }
  0xc1   : > { %1535 = vmatprep.mubr.f32.mxu0 %v256_v48  ;;  %1631 = vmatprep.mubr.f32.mxu1 %v320_v49 }
  0xc4   : > { %1536 = vmatmul.mubr.f32.gmra.mxu0 %v257_v50  ;;  %1632 = vmatmul.mubr.f32.gmra.mxu1 %v321_v51 }
  0xc5   : > { %1538 = vmatprep.mubr.f32.mxu0 %v258_v52  ;;  %1634 = vmatprep.mubr.f32.mxu1 %v322_v53 }
  0xc8   : > { %1539 = vmatmul.mubr.f32.gmra.mxu0 %v259_v54  ;;  %1635 = vmatmul.mubr.f32.gmra.mxu1 %v323_v55 }
  0xc9   : > { %1541 = vmatprep.mubr.f32.mxu0 %v260_v56  ;;  %1637 = vmatprep.mubr.f32.mxu1 %v324_v57 }
  0xcc   : > { %1542 = vmatmul.mubr.f32.gmra.mxu0 %v261_v58  ;;  %1638 = vmatmul.mubr.f32.gmra.mxu1 %v325_v59 }
  0xcd   : > { %1544 = vmatprep.mubr.f32.mxu0 %v262_v60  ;;  %1640 = vmatprep.mubr.f32.mxu1 %v326_v61 }
  0xd0   : > { %1545 = vmatmul.mubr.f32.gmra.mxu0 %v263_v62  ;;  %1641 = vmatmul.mubr.f32.gmra.mxu1 %v327_v63 }
  0xd1   : > { %1547 = vmatprep.mubr.f32.mxu0 %v264_v0  ;;  %1643 = vmatprep.mubr.f32.mxu1 %v328_v1 }
  0xd4   : > { %1548 = vmatmul.mubr.f32.gmra.mxu0 %v265_v2  ;;  %1644 = vmatmul.mubr.f32.gmra.mxu1 %v329_v3 }
  0xd5   : > { %1550 = vmatprep.mubr.f32.mxu0 %v266_v4  ;;  %1646 = vmatprep.mubr.f32.mxu1 %v330_v5 }
  0xd8   : > { %1551 = vmatmul.mubr.f32.gmra.mxu0 %v267_v6  ;;  %1647 = vmatmul.mubr.f32.gmra.mxu1 %v331_v7 }
  0xd9   : > { %1553 = vmatprep.mubr.f32.mxu0 %v268_v8  ;;  %1649 = vmatprep.mubr.f32.mxu1 %v332_v9 }
  0xdc   : > { %1554 = vmatmul.mubr.f32.gmra.mxu0 %v269_v10  ;;  %1650 = vmatmul.mubr.f32.gmra.mxu1 %v333_v11 }
  0xdd   : > { %1556 = vmatprep.mubr.f32.mxu0 %v270_v12  ;;  %1652 = vmatprep.mubr.f32.mxu1 %v334_v13 }
  0xe0   : > { %1557 = vmatmul.mubr.f32.gmra.mxu0 %v271_v14  ;;  %1653 = vmatmul.mubr.f32.gmra.mxu1 %v335_v15 }
 0x124   : > { %v1465_v17 = vpop.f32.mrf.mxu0  ;;  %v1561_v18 = vpop.f32.mrf.mxu1 }
 0x125   : > { %v431_v19 = vadd.f32 %v1465_v17, %v2109_v16  ;;  %v751_v20 = vadd.f32 %v1561_v18, %v2109_v16 }
 0x126   : > { %v425_v21 = vpop.f32.mrf.mxu0  ;;  %v745_v22 = vpop.f32.mrf.mxu1 }
 0x127   : > { %1066 = vst.msk [vmem:[%s2114_s12 + $0x8] sm:$0xff] %vm1064_vm0, %v431_v19  ;;  %1130 = vst.msk [vmem:[%s2114_s12 + $0x208] sm:$0xff] %vm1064_vm0, %v751_v20  ;;  %v426_v23 = vadd.f32 %v2109_v16, %v425_v21  ;;  %v746_v24 = vadd.f32 %v2109_v16, %v745_v22 }
 0x128   : > { %v1468_v25 = vpop.f32.mrf.mxu0  ;;  %v1564_v26 = vpop.f32.mrf.mxu1 }
 0x129   : > { %1065 = vst.msk [vmem:[%s2114_s12] sm:$0xff] %vm1064_vm0, %v426_v23  ;;  %1129 = vst.msk [vmem:[%s2114_s12 + $0x200] sm:$0xff] %vm1064_vm0, %v746_v24  ;;  %v441_v27 = vadd.f32 %v1468_v25, %v2109_v16  ;;  %v761_v28 = vadd.f32 %v1564_v26, %v2109_v16 }
 0x12a   : > { %v435_v29 = vpop.f32.mrf.mxu0  ;;  %v755_v30 = vpop.f32.mrf.mxu1 }
 0x12b   : > { %1068 = vst.msk [vmem:[%s2114_s12 + $0x18] sm:$0xff] %vm1064_vm0, %v441_v27  ;;  %1132 = vst.msk [vmem:[%s2114_s12 + $0x218] sm:$0xff] %vm1064_vm0, %v761_v28  ;;  %v436_v31 = vadd.f32 %v2109_v16, %v435_v29  ;;  %v756_v32 = vadd.f32 %v2109_v16, %v755_v30 }
 0x12c   : > { %v1471_v33 = vpop.f32.mrf.mxu0  ;;  %v1567_v34 = vpop.f32.mrf.mxu1 }
 0x12d   : > { %1067 = vst.msk [vmem:[%s2114_s12 + $0x10] sm:$0xff] %vm1064_vm0, %v436_v31  ;;  %1131 = vst.msk [vmem:[%s2114_s12 + $0x210] sm:$0xff] %vm1064_vm0, %v756_v32  ;;  %v451_v35 = vadd.f32 %v1471_v33, %v2109_v16  ;;  %v771_v36 = vadd.f32 %v1567_v34, %v2109_v16 }
 0x12e   : > { %v445_v37 = vpop.f32.mrf.mxu0  ;;  %v765_v38 = vpop.f32.mrf.mxu1 }
 0x12f   : > { %1070 = vst.msk [vmem:[%s2114_s12 + $0x28] sm:$0xff] %vm1064_vm0, %v451_v35  ;;  %1134 = vst.msk [vmem:[%s2114_s12 + $0x228] sm:$0xff] %vm1064_vm0, %v771_v36  ;;  %v446_v39 = vadd.f32 %v2109_v16, %v445_v37  ;;  %v766_v40 = vadd.f32 %v2109_v16, %v765_v38 }
 0x130   : > { %v1474_v41 = vpop.f32.mrf.mxu0  ;;  %v1570_v42 = vpop.f32.mrf.mxu1 }
 0x131   : > { %1069 = vst.msk [vmem:[%s2114_s12 + $0x20] sm:$0xff] %vm1064_vm0, %v446_v39  ;;  %1133 = vst.msk [vmem:[%s2114_s12 + $0x220] sm:$0xff] %vm1064_vm0, %v766_v40  ;;  %v461_v43 = vadd.f32 %v1474_v41, %v2109_v16  ;;  %v781_v44 = vadd.f32 %v1570_v42, %v2109_v16 }
 0x132   : > { %v455_v45 = vpop.f32.mrf.mxu0  ;;  %v775_v46 = vpop.f32.mrf.mxu1 }
 0x133   : > { %1072 = vst.msk [vmem:[%s2114_s12 + $0x38] sm:$0xff] %vm1064_vm0, %v461_v43  ;;  %1136 = vst.msk [vmem:[%s2114_s12 + $0x238] sm:$0xff] %vm1064_vm0, %v781_v44  ;;  %v456_v47 = vadd.f32 %v2109_v16, %v455_v45  ;;  %v776_v48 = vadd.f32 %v2109_v16, %v775_v46 }
 0x134   : > { %v1477_v49 = vpop.f32.mrf.mxu0  ;;  %v1573_v50 = vpop.f32.mrf.mxu1 }
 0x135   : > { %1071 = vst.msk [vmem:[%s2114_s12 + $0x30] sm:$0xff] %vm1064_vm0, %v456_v47  ;;  %1135 = vst.msk [vmem:[%s2114_s12 + $0x230] sm:$0xff] %vm1064_vm0, %v776_v48  ;;  %v471_v51 = vadd.f32 %v1477_v49, %v2109_v16  ;;  %v791_v52 = vadd.f32 %v1573_v50, %v2109_v16 }
 0x136   : > { %v465_v53 = vpop.f32.mrf.mxu0  ;;  %v785_v54 = vpop.f32.mrf.mxu1 }
 0x137   : > { %1074 = vst.msk [vmem:[%s2114_s12 + $0x48] sm:$0xff] %vm1064_vm0, %v471_v51  ;;  %1138 = vst.msk [vmem:[%s2114_s12 + $0x248] sm:$0xff] %vm1064_vm0, %v791_v52  ;;  %v466_v55 = vadd.f32 %v2109_v16, %v465_v53  ;;  %v786_v56 = vadd.f32 %v2109_v16, %v785_v54 }
 0x138   : > { %v1480_v57 = vpop.f32.mrf.mxu0  ;;  %v1576_v58 = vpop.f32.mrf.mxu1 }
 0x139   : > { %1073 = vst.msk [vmem:[%s2114_s12 + $0x40] sm:$0xff] %vm1064_vm0, %v466_v55  ;;  %1137 = vst.msk [vmem:[%s2114_s12 + $0x240] sm:$0xff] %vm1064_vm0, %v786_v56  ;;  %v481_v59 = vadd.f32 %v1480_v57, %v2109_v16  ;;  %v801_v60 = vadd.f32 %v1576_v58, %v2109_v16 }
 0x13a   : > { %v475_v61 = vpop.f32.mrf.mxu0  ;;  %v795_v62 = vpop.f32.mrf.mxu1 }
 0x13b   : > { %1076 = vst.msk [vmem:[%s2114_s12 + $0x58] sm:$0xff] %vm1064_vm0, %v481_v59  ;;  %1140 = vst.msk [vmem:[%s2114_s12 + $0x258] sm:$0xff] %vm1064_vm0, %v801_v60  ;;  %v476_v63 = vadd.f32 %v2109_v16, %v475_v61  ;;  %v796_v0 = vadd.f32 %v2109_v16, %v795_v62 }
 0x13c   : > { %v1483_v1 = vpop.f32.mrf.mxu0  ;;  %v1579_v2 = vpop.f32.mrf.mxu1 }
 0x13d   : > { %1075 = vst.msk [vmem:[%s2114_s12 + $0x50] sm:$0xff] %vm1064_vm0, %v476_v63  ;;  %1139 = vst.msk [vmem:[%s2114_s12 + $0x250] sm:$0xff] %vm1064_vm0, %v796_v0  ;;  %v491_v3 = vadd.f32 %v1483_v1, %v2109_v16  ;;  %v811_v4 = vadd.f32 %v1579_v2, %v2109_v16 }
 0x13e   : > { %v485_v5 = vpop.f32.mrf.mxu0  ;;  %v805_v6 = vpop.f32.mrf.mxu1 }
 0x13f   : > { %1078 = vst.msk [vmem:[%s2114_s12 + $0x68] sm:$0xff] %vm1064_vm0, %v491_v3  ;;  %1142 = vst.msk [vmem:[%s2114_s12 + $0x268] sm:$0xff] %vm1064_vm0, %v811_v4  ;;  %v486_v7 = vadd.f32 %v2109_v16, %v485_v5  ;;  %v806_v8 = vadd.f32 %v2109_v16, %v805_v6 }
 0x140   : > { %v1486_v9 = vpop.f32.mrf.mxu0  ;;  %v1582_v10 = vpop.f32.mrf.mxu1 }
 0x141   : > { %1077 = vst.msk [vmem:[%s2114_s12 + $0x60] sm:$0xff] %vm1064_vm0, %v486_v7  ;;  %1141 = vst.msk [vmem:[%s2114_s12 + $0x260] sm:$0xff] %vm1064_vm0, %v806_v8  ;;  %v501_v11 = vadd.f32 %v1486_v9, %v2109_v16  ;;  %v821_v12 = vadd.f32 %v1582_v10, %v2109_v16 }
 0x142   : > { %v495_v13 = vpop.f32.mrf.mxu0  ;;  %v815_v14 = vpop.f32.mrf.mxu1 }
 0x143   : > { %1080 = vst.msk [vmem:[%s2114_s12 + $0x78] sm:$0xff] %vm1064_vm0, %v501_v11  ;;  %1144 = vst.msk [vmem:[%s2114_s12 + $0x278] sm:$0xff] %vm1064_vm0, %v821_v12  ;;  %v496_v15 = vadd.f32 %v2109_v16, %v495_v13  ;;  %v816_v17 = vadd.f32 %v2109_v16, %v815_v14 }
 0x144   : > { %v1489_v18 = vpop.f32.mrf.mxu0  ;;  %v1585_v19 = vpop.f32.mrf.mxu1 }
 0x145   : > { %1079 = vst.msk [vmem:[%s2114_s12 + $0x70] sm:$0xff] %vm1064_vm0, %v496_v15  ;;  %1143 = vst.msk [vmem:[%s2114_s12 + $0x270] sm:$0xff] %vm1064_vm0, %v816_v17  ;;  %v511_v20 = vadd.f32 %v1489_v18, %v2109_v16  ;;  %v831_v21 = vadd.f32 %v1585_v19, %v2109_v16 }
 0x146   : > { %v505_v22 = vpop.f32.mrf.mxu0  ;;  %v825_v23 = vpop.f32.mrf.mxu1 }
 0x147   : > { %1082 = vst.msk [vmem:[%s2114_s12 + $0x88] sm:$0xff] %vm1064_vm0, %v511_v20  ;;  %1146 = vst.msk [vmem:[%s2114_s12 + $0x288] sm:$0xff] %vm1064_vm0, %v831_v21  ;;  %v506_v24 = vadd.f32 %v2109_v16, %v505_v22  ;;  %v826_v25 = vadd.f32 %v2109_v16, %v825_v23 }
 0x148   : > { %v1492_v26 = vpop.f32.mrf.mxu0  ;;  %v1588_v27 = vpop.f32.mrf.mxu1 }
 0x149   : > { %1081 = vst.msk [vmem:[%s2114_s12 + $0x80] sm:$0xff] %vm1064_vm0, %v506_v24  ;;  %1145 = vst.msk [vmem:[%s2114_s12 + $0x280] sm:$0xff] %vm1064_vm0, %v826_v25  ;;  %v521_v28 = vadd.f32 %v1492_v26, %v2109_v16  ;;  %v841_v29 = vadd.f32 %v1588_v27, %v2109_v16 }
 0x14a   : > { %v515_v30 = vpop.f32.mrf.mxu0  ;;  %v835_v31 = vpop.f32.mrf.mxu1 }
 0x14b   : > { %1084 = vst.msk [vmem:[%s2114_s12 + $0x98] sm:$0xff] %vm1064_vm0, %v521_v28  ;;  %1148 = vst.msk [vmem:[%s2114_s12 + $0x298] sm:$0xff] %vm1064_vm0, %v841_v29  ;;  %v516_v32 = vadd.f32 %v2109_v16, %v515_v30  ;;  %v836_v33 = vadd.f32 %v2109_v16, %v835_v31 }
 0x14c   : > { %v1495_v34 = vpop.f32.mrf.mxu0  ;;  %v1591_v35 = vpop.f32.mrf.mxu1 }
 0x14d   : > { %1083 = vst.msk [vmem:[%s2114_s12 + $0x90] sm:$0xff] %vm1064_vm0, %v516_v32  ;;  %1147 = vst.msk [vmem:[%s2114_s12 + $0x290] sm:$0xff] %vm1064_vm0, %v836_v33  ;;  %v531_v36 = vadd.f32 %v1495_v34, %v2109_v16  ;;  %v851_v37 = vadd.f32 %v1591_v35, %v2109_v16 }
 0x14e   : > { %v525_v38 = vpop.f32.mrf.mxu0  ;;  %v845_v39 = vpop.f32.mrf.mxu1 }
 0x14f   : > { %1086 = vst.msk [vmem:[%s2114_s12 + $0xa8] sm:$0xff] %vm1064_vm0, %v531_v36  ;;  %1150 = vst.msk [vmem:[%s2114_s12 + $0x2a8] sm:$0xff] %vm1064_vm0, %v851_v37  ;;  %v526_v40 = vadd.f32 %v2109_v16, %v525_v38  ;;  %v846_v41 = vadd.f32 %v2109_v16, %v845_v39 }
 0x150   : > { %v1498_v42 = vpop.f32.mrf.mxu0  ;;  %v1594_v43 = vpop.f32.mrf.mxu1 }
 0x151   : > { %1085 = vst.msk [vmem:[%s2114_s12 + $0xa0] sm:$0xff] %vm1064_vm0, %v526_v40  ;;  %1149 = vst.msk [vmem:[%s2114_s12 + $0x2a0] sm:$0xff] %vm1064_vm0, %v846_v41  ;;  %v541_v44 = vadd.f32 %v1498_v42, %v2109_v16  ;;  %v861_v45 = vadd.f32 %v1594_v43, %v2109_v16 }
 0x152   : > { %v535_v46 = vpop.f32.mrf.mxu0  ;;  %v855_v47 = vpop.f32.mrf.mxu1 }
 0x153   : > { %1088 = vst.msk [vmem:[%s2114_s12 + $0xb8] sm:$0xff] %vm1064_vm0, %v541_v44  ;;  %1152 = vst.msk [vmem:[%s2114_s12 + $0x2b8] sm:$0xff] %vm1064_vm0, %v861_v45  ;;  %v536_v48 = vadd.f32 %v2109_v16, %v535_v46  ;;  %v856_v49 = vadd.f32 %v2109_v16, %v855_v47 }
 0x154   : > { %v1501_v50 = vpop.f32.mrf.mxu0  ;;  %v1597_v51 = vpop.f32.mrf.mxu1 }
 0x155   : > { %1087 = vst.msk [vmem:[%s2114_s12 + $0xb0] sm:$0xff] %vm1064_vm0, %v536_v48  ;;  %1151 = vst.msk [vmem:[%s2114_s12 + $0x2b0] sm:$0xff] %vm1064_vm0, %v856_v49  ;;  %v551_v52 = vadd.f32 %v1501_v50, %v2109_v16  ;;  %v871_v53 = vadd.f32 %v1597_v51, %v2109_v16 }
 0x156   : > { %v545_v54 = vpop.f32.mrf.mxu0  ;;  %v865_v55 = vpop.f32.mrf.mxu1 }
 0x157   : > { %1090 = vst.msk [vmem:[%s2114_s12 + $0xc8] sm:$0xff] %vm1064_vm0, %v551_v52  ;;  %1154 = vst.msk [vmem:[%s2114_s12 + $0x2c8] sm:$0xff] %vm1064_vm0, %v871_v53  ;;  %v546_v56 = vadd.f32 %v2109_v16, %v545_v54  ;;  %v866_v57 = vadd.f32 %v2109_v16, %v865_v55 }
 0x158   : > { %v1504_v58 = vpop.f32.mrf.mxu0  ;;  %v1600_v59 = vpop.f32.mrf.mxu1 }
 0x159   : > { %1089 = vst.msk [vmem:[%s2114_s12 + $0xc0] sm:$0xff] %vm1064_vm0, %v546_v56  ;;  %1153 = vst.msk [vmem:[%s2114_s12 + $0x2c0] sm:$0xff] %vm1064_vm0, %v866_v57  ;;  %v561_v60 = vadd.f32 %v1504_v58, %v2109_v16  ;;  %v881_v61 = vadd.f32 %v1600_v59, %v2109_v16 }
 0x15a   : > { %v555_v62 = vpop.f32.mrf.mxu0  ;;  %v875_v63 = vpop.f32.mrf.mxu1 }
 0x15b   : > { %1092 = vst.msk [vmem:[%s2114_s12 + $0xd8] sm:$0xff] %vm1064_vm0, %v561_v60  ;;  %1156 = vst.msk [vmem:[%s2114_s12 + $0x2d8] sm:$0xff] %vm1064_vm0, %v881_v61  ;;  %v556_v0 = vadd.f32 %v2109_v16, %v555_v62  ;;  %v876_v1 = vadd.f32 %v2109_v16, %v875_v63 }
 0x15c   : > { %v1507_v2 = vpop.f32.mrf.mxu0  ;;  %v1603_v3 = vpop.f32.mrf.mxu1 }
 0x15d   : > { %1091 = vst.msk [vmem:[%s2114_s12 + $0xd0] sm:$0xff] %vm1064_vm0, %v556_v0  ;;  %1155 = vst.msk [vmem:[%s2114_s12 + $0x2d0] sm:$0xff] %vm1064_vm0, %v876_v1  ;;  %v571_v4 = vadd.f32 %v1507_v2, %v2109_v16  ;;  %v891_v5 = vadd.f32 %v1603_v3, %v2109_v16 }
 0x15e   : > { %v565_v6 = vpop.f32.mrf.mxu0  ;;  %v885_v7 = vpop.f32.mrf.mxu1 }
 0x15f   : > { %1094 = vst.msk [vmem:[%s2114_s12 + $0xe8] sm:$0xff] %vm1064_vm0, %v571_v4  ;;  %1158 = vst.msk [vmem:[%s2114_s12 + $0x2e8] sm:$0xff] %vm1064_vm0, %v891_v5  ;;  %v566_v8 = vadd.f32 %v2109_v16, %v565_v6  ;;  %v886_v9 = vadd.f32 %v2109_v16, %v885_v7 }
 0x160   : > { %v1510_v10 = vpop.f32.mrf.mxu0  ;;  %v1606_v11 = vpop.f32.mrf.mxu1 }
 0x161   : > { %1093 = vst.msk [vmem:[%s2114_s12 + $0xe0] sm:$0xff] %vm1064_vm0, %v566_v8  ;;  %1157 = vst.msk [vmem:[%s2114_s12 + $0x2e0] sm:$0xff] %vm1064_vm0, %v886_v9  ;;  %v581_v12 = vadd.f32 %v1510_v10, %v2109_v16  ;;  %v901_v13 = vadd.f32 %v1606_v11, %v2109_v16 }
 0x162   : > { %v575_v14 = vpop.f32.mrf.mxu0  ;;  %v895_v15 = vpop.f32.mrf.mxu1 }
 0x163   : > { %1096 = vst.msk [vmem:[%s2114_s12 + $0xf8] sm:$0xff] %vm1064_vm0, %v581_v12  ;;  %1160 = vst.msk [vmem:[%s2114_s12 + $0x2f8] sm:$0xff] %vm1064_vm0, %v901_v13  ;;  %v576_v17 = vadd.f32 %v2109_v16, %v575_v14  ;;  %v896_v18 = vadd.f32 %v2109_v16, %v895_v15 }
 0x164   : > { %v1513_v19 = vpop.f32.mrf.mxu0  ;;  %v1609_v20 = vpop.f32.mrf.mxu1 }
 0x165   : > { %1095 = vst.msk [vmem:[%s2114_s12 + $0xf0] sm:$0xff] %vm1064_vm0, %v576_v17  ;;  %1159 = vst.msk [vmem:[%s2114_s12 + $0x2f0] sm:$0xff] %vm1064_vm0, %v896_v18  ;;  %v591_v21 = vadd.f32 %v1513_v19, %v2109_v16  ;;  %v911_v22 = vadd.f32 %v1609_v20, %v2109_v16 }
 0x166   : > { %v585_v23 = vpop.f32.mrf.mxu0  ;;  %v905_v24 = vpop.f32.mrf.mxu1 }
 0x167   : > { %1098 = vst.msk [vmem:[%s2114_s12 + $0x108] sm:$0xff] %vm1064_vm0, %v591_v21  ;;  %1162 = vst.msk [vmem:[%s2114_s12 + $0x308] sm:$0xff] %vm1064_vm0, %v911_v22  ;;  %v586_v25 = vadd.f32 %v2109_v16, %v585_v23  ;;  %v906_v26 = vadd.f32 %v2109_v16, %v905_v24 }
 0x168   : > { %v1516_v27 = vpop.f32.mrf.mxu0  ;;  %v1612_v28 = vpop.f32.mrf.mxu1 }
 0x169   : > { %1097 = vst.msk [vmem:[%s2114_s12 + $0x100] sm:$0xff] %vm1064_vm0, %v586_v25  ;;  %1161 = vst.msk [vmem:[%s2114_s12 + $0x300] sm:$0xff] %vm1064_vm0, %v906_v26  ;;  %v601_v29 = vadd.f32 %v1516_v27, %v2109_v16  ;;  %v921_v30 = vadd.f32 %v1612_v28, %v2109_v16 }
 0x16a   : > { %v595_v31 = vpop.f32.mrf.mxu0  ;;  %v915_v32 = vpop.f32.mrf.mxu1 }
 0x16b   : > { %1100 = vst.msk [vmem:[%s2114_s12 + $0x118] sm:$0xff] %vm1064_vm0, %v601_v29  ;;  %1164 = vst.msk [vmem:[%s2114_s12 + $0x318] sm:$0xff] %vm1064_vm0, %v921_v30  ;;  %v596_v33 = vadd.f32 %v2109_v16, %v595_v31  ;;  %v916_v34 = vadd.f32 %v2109_v16, %v915_v32 }
 0x16c   : > { %v1519_v35 = vpop.f32.mrf.mxu0  ;;  %v1615_v36 = vpop.f32.mrf.mxu1 }
 0x16d   : > { %1099 = vst.msk [vmem:[%s2114_s12 + $0x110] sm:$0xff] %vm1064_vm0, %v596_v33  ;;  %1163 = vst.msk [vmem:[%s2114_s12 + $0x310] sm:$0xff] %vm1064_vm0, %v916_v34  ;;  %v611_v37 = vadd.f32 %v1519_v35, %v2109_v16  ;;  %v931_v38 = vadd.f32 %v1615_v36, %v2109_v16 }
 0x16e   : > { %v605_v39 = vpop.f32.mrf.mxu0  ;;  %v925_v40 = vpop.f32.mrf.mxu1 }
 0x16f   : > { %1102 = vst.msk [vmem:[%s2114_s12 + $0x128] sm:$0xff] %vm1064_vm0, %v611_v37  ;;  %1166 = vst.msk [vmem:[%s2114_s12 + $0x328] sm:$0xff] %vm1064_vm0, %v931_v38  ;;  %v606_v41 = vadd.f32 %v2109_v16, %v605_v39  ;;  %v926_v42 = vadd.f32 %v2109_v16, %v925_v40 }
 0x170   : > { %v1522_v43 = vpop.f32.mrf.mxu0  ;;  %v1618_v44 = vpop.f32.mrf.mxu1 }
 0x171   : > { %1101 = vst.msk [vmem:[%s2114_s12 + $0x120] sm:$0xff] %vm1064_vm0, %v606_v41  ;;  %1165 = vst.msk [vmem:[%s2114_s12 + $0x320] sm:$0xff] %vm1064_vm0, %v926_v42  ;;  %v621_v45 = vadd.f32 %v1522_v43, %v2109_v16  ;;  %v941_v46 = vadd.f32 %v1618_v44, %v2109_v16 }
 0x172   : > { %v615_v47 = vpop.f32.mrf.mxu0  ;;  %v935_v48 = vpop.f32.mrf.mxu1 }
 0x173   : > { %1104 = vst.msk [vmem:[%s2114_s12 + $0x138] sm:$0xff] %vm1064_vm0, %v621_v45  ;;  %1168 = vst.msk [vmem:[%s2114_s12 + $0x338] sm:$0xff] %vm1064_vm0, %v941_v46  ;;  %v616_v49 = vadd.f32 %v2109_v16, %v615_v47  ;;  %v936_v50 = vadd.f32 %v2109_v16, %v935_v48 }
 0x174   : > { %v1525_v51 = vpop.f32.mrf.mxu0  ;;  %v1621_v52 = vpop.f32.mrf.mxu1 }
 0x175   : > { %1103 = vst.msk [vmem:[%s2114_s12 + $0x130] sm:$0xff] %vm1064_vm0, %v616_v49  ;;  %1167 = vst.msk [vmem:[%s2114_s12 + $0x330] sm:$0xff] %vm1064_vm0, %v936_v50  ;;  %v631_v53 = vadd.f32 %v1525_v51, %v2109_v16  ;;  %v951_v54 = vadd.f32 %v1621_v52, %v2109_v16 }
 0x176   : > { %v625_v55 = vpop.f32.mrf.mxu0  ;;  %v945_v56 = vpop.f32.mrf.mxu1 }
 0x177   : > { %1106 = vst.msk [vmem:[%s2114_s12 + $0x148] sm:$0xff] %vm1064_vm0, %v631_v53  ;;  %1170 = vst.msk [vmem:[%s2114_s12 + $0x348] sm:$0xff] %vm1064_vm0, %v951_v54  ;;  %v626_v57 = vadd.f32 %v2109_v16, %v625_v55  ;;  %v946_v58 = vadd.f32 %v2109_v16, %v945_v56 }
 0x178   : > { %v1528_v59 = vpop.f32.mrf.mxu0  ;;  %v1624_v60 = vpop.f32.mrf.mxu1 }
 0x179   : > { %1105 = vst.msk [vmem:[%s2114_s12 + $0x140] sm:$0xff] %vm1064_vm0, %v626_v57  ;;  %1169 = vst.msk [vmem:[%s2114_s12 + $0x340] sm:$0xff] %vm1064_vm0, %v946_v58  ;;  %v641_v61 = vadd.f32 %v1528_v59, %v2109_v16  ;;  %v961_v62 = vadd.f32 %v1624_v60, %v2109_v16 }
 0x17a   : > { %v635_v63 = vpop.f32.mrf.mxu0  ;;  %v955_v0 = vpop.f32.mrf.mxu1 }
 0x17b   : > { %1108 = vst.msk [vmem:[%s2114_s12 + $0x158] sm:$0xff] %vm1064_vm0, %v641_v61  ;;  %1172 = vst.msk [vmem:[%s2114_s12 + $0x358] sm:$0xff] %vm1064_vm0, %v961_v62  ;;  %v636_v1 = vadd.f32 %v2109_v16, %v635_v63  ;;  %v956_v2 = vadd.f32 %v2109_v16, %v955_v0 }
 0x17c   : > { %v1531_v3 = vpop.f32.mrf.mxu0  ;;  %v1627_v4 = vpop.f32.mrf.mxu1 }
 0x17d   : > { %1107 = vst.msk [vmem:[%s2114_s12 + $0x150] sm:$0xff] %vm1064_vm0, %v636_v1  ;;  %1171 = vst.msk [vmem:[%s2114_s12 + $0x350] sm:$0xff] %vm1064_vm0, %v956_v2  ;;  %v651_v5 = vadd.f32 %v1531_v3, %v2109_v16  ;;  %v971_v6 = vadd.f32 %v1627_v4, %v2109_v16 }
 0x17e   : > { %v645_v7 = vpop.f32.mrf.mxu0  ;;  %v965_v8 = vpop.f32.mrf.mxu1 }
 0x17f   : > { %1110 = vst.msk [vmem:[%s2114_s12 + $0x168] sm:$0xff] %vm1064_vm0, %v651_v5  ;;  %1174 = vst.msk [vmem:[%s2114_s12 + $0x368] sm:$0xff] %vm1064_vm0, %v971_v6  ;;  %v646_v9 = vadd.f32 %v2109_v16, %v645_v7  ;;  %v966_v10 = vadd.f32 %v2109_v16, %v965_v8 }
 0x180   : > { %v1534_v11 = vpop.f32.mrf.mxu0  ;;  %v1630_v12 = vpop.f32.mrf.mxu1 }
 0x181   : > { %1109 = vst.msk [vmem:[%s2114_s12 + $0x160] sm:$0xff] %vm1064_vm0, %v646_v9  ;;  %1173 = vst.msk [vmem:[%s2114_s12 + $0x360] sm:$0xff] %vm1064_vm0, %v966_v10  ;;  %v661_v13 = vadd.f32 %v1534_v11, %v2109_v16  ;;  %v981_v14 = vadd.f32 %v1630_v12, %v2109_v16 }
 0x182   : > { %v655_v15 = vpop.f32.mrf.mxu0  ;;  %v975_v17 = vpop.f32.mrf.mxu1 }
 0x183   : > { %1112 = vst.msk [vmem:[%s2114_s12 + $0x178] sm:$0xff] %vm1064_vm0, %v661_v13  ;;  %1176 = vst.msk [vmem:[%s2114_s12 + $0x378] sm:$0xff] %vm1064_vm0, %v981_v14  ;;  %v656_v18 = vadd.f32 %v2109_v16, %v655_v15  ;;  %v976_v19 = vadd.f32 %v2109_v16, %v975_v17 }
 0x184   : > { %v1537_v20 = vpop.f32.mrf.mxu0  ;;  %v1633_v21 = vpop.f32.mrf.mxu1 }
 0x185   : > { %1111 = vst.msk [vmem:[%s2114_s12 + $0x170] sm:$0xff] %vm1064_vm0, %v656_v18  ;;  %1175 = vst.msk [vmem:[%s2114_s12 + $0x370] sm:$0xff] %vm1064_vm0, %v976_v19  ;;  %v671_v22 = vadd.f32 %v1537_v20, %v2109_v16  ;;  %v991_v23 = vadd.f32 %v1633_v21, %v2109_v16 }
 0x186   : > { %v665_v24 = vpop.f32.mrf.mxu0  ;;  %v985_v25 = vpop.f32.mrf.mxu1 }
 0x187   : > { %1114 = vst.msk [vmem:[%s2114_s12 + $0x188] sm:$0xff] %vm1064_vm0, %v671_v22  ;;  %1178 = vst.msk [vmem:[%s2114_s12 + $0x388] sm:$0xff] %vm1064_vm0, %v991_v23  ;;  %v666_v26 = vadd.f32 %v2109_v16, %v665_v24  ;;  %v986_v27 = vadd.f32 %v2109_v16, %v985_v25 }
 0x188   : > { %v1540_v28 = vpop.f32.mrf.mxu0  ;;  %v1636_v29 = vpop.f32.mrf.mxu1 }
 0x189   : > { %1113 = vst.msk [vmem:[%s2114_s12 + $0x180] sm:$0xff] %vm1064_vm0, %v666_v26  ;;  %1177 = vst.msk [vmem:[%s2114_s12 + $0x380] sm:$0xff] %vm1064_vm0, %v986_v27  ;;  %v681_v30 = vadd.f32 %v1540_v28, %v2109_v16  ;;  %v1001_v31 = vadd.f32 %v1636_v29, %v2109_v16 }
 0x18a   : > { %v675_v32 = vpop.f32.mrf.mxu0  ;;  %v995_v33 = vpop.f32.mrf.mxu1 }
 0x18b   : > { %1116 = vst.msk [vmem:[%s2114_s12 + $0x198] sm:$0xff] %vm1064_vm0, %v681_v30  ;;  %1180 = vst.msk [vmem:[%s2114_s12 + $0x398] sm:$0xff] %vm1064_vm0, %v1001_v31  ;;  %v676_v34 = vadd.f32 %v2109_v16, %v675_v32  ;;  %v996_v35 = vadd.f32 %v2109_v16, %v995_v33 }
 0x18c   : > { %v1543_v36 = vpop.f32.mrf.mxu0  ;;  %v1639_v37 = vpop.f32.mrf.mxu1 }
 0x18d   : > { %1115 = vst.msk [vmem:[%s2114_s12 + $0x190] sm:$0xff] %vm1064_vm0, %v676_v34  ;;  %1179 = vst.msk [vmem:[%s2114_s12 + $0x390] sm:$0xff] %vm1064_vm0, %v996_v35  ;;  %v691_v38 = vadd.f32 %v1543_v36, %v2109_v16  ;;  %v1011_v39 = vadd.f32 %v1639_v37, %v2109_v16 }
 0x18e   : > { %v685_v40 = vpop.f32.mrf.mxu0  ;;  %v1005_v41 = vpop.f32.mrf.mxu1 }
 0x18f   : > { %1118 = vst.msk [vmem:[%s2114_s12 + $0x1a8] sm:$0xff] %vm1064_vm0, %v691_v38  ;;  %1182 = vst.msk [vmem:[%s2114_s12 + $0x3a8] sm:$0xff] %vm1064_vm0, %v1011_v39  ;;  %v686_v42 = vadd.f32 %v2109_v16, %v685_v40  ;;  %v1006_v43 = vadd.f32 %v2109_v16, %v1005_v41 }
 0x190   : > { %v1546_v44 = vpop.f32.mrf.mxu0  ;;  %v1642_v45 = vpop.f32.mrf.mxu1 }
 0x191   : > { %1117 = vst.msk [vmem:[%s2114_s12 + $0x1a0] sm:$0xff] %vm1064_vm0, %v686_v42  ;;  %1181 = vst.msk [vmem:[%s2114_s12 + $0x3a0] sm:$0xff] %vm1064_vm0, %v1006_v43  ;;  %v701_v46 = vadd.f32 %v1546_v44, %v2109_v16  ;;  %v1021_v47 = vadd.f32 %v1642_v45, %v2109_v16 }
 0x192   : > { %v695_v48 = vpop.f32.mrf.mxu0  ;;  %v1015_v49 = vpop.f32.mrf.mxu1 }
 0x193   : > { %1120 = vst.msk [vmem:[%s2114_s12 + $0x1b8] sm:$0xff] %vm1064_vm0, %v701_v46  ;;  %1184 = vst.msk [vmem:[%s2114_s12 + $0x3b8] sm:$0xff] %vm1064_vm0, %v1021_v47  ;;  %v696_v50 = vadd.f32 %v2109_v16, %v695_v48  ;;  %v1016_v51 = vadd.f32 %v2109_v16, %v1015_v49 }
 0x194   : > { %v1549_v52 = vpop.f32.mrf.mxu0  ;;  %v1645_v53 = vpop.f32.mrf.mxu1 }
 0x195   : > { %1119 = vst.msk [vmem:[%s2114_s12 + $0x1b0] sm:$0xff] %vm1064_vm0, %v696_v50  ;;  %1183 = vst.msk [vmem:[%s2114_s12 + $0x3b0] sm:$0xff] %vm1064_vm0, %v1016_v51  ;;  %v711_v54 = vadd.f32 %v1549_v52, %v2109_v16  ;;  %v1031_v55 = vadd.f32 %v1645_v53, %v2109_v16 }
 0x196   : > { %v705_v56 = vpop.f32.mrf.mxu0  ;;  %v1025_v57 = vpop.f32.mrf.mxu1 }
 0x197   : > { %1122 = vst.msk [vmem:[%s2114_s12 + $0x1c8] sm:$0xff] %vm1064_vm0, %v711_v54  ;;  %1186 = vst.msk [vmem:[%s2114_s12 + $0x3c8] sm:$0xff] %vm1064_vm0, %v1031_v55  ;;  %v706_v58 = vadd.f32 %v2109_v16, %v705_v56  ;;  %v1026_v59 = vadd.f32 %v2109_v16, %v1025_v57 }
 0x198   : > { %v1552_v60 = vpop.f32.mrf.mxu0  ;;  %v1648_v61 = vpop.f32.mrf.mxu1 }
 0x199   : > { %1121 = vst.msk [vmem:[%s2114_s12 + $0x1c0] sm:$0xff] %vm1064_vm0, %v706_v58  ;;  %1185 = vst.msk [vmem:[%s2114_s12 + $0x3c0] sm:$0xff] %vm1064_vm0, %v1026_v59  ;;  %v721_v62 = vadd.f32 %v1552_v60, %v2109_v16  ;;  %v1041_v63 = vadd.f32 %v1648_v61, %v2109_v16 }
 0x19a   : > { %v715_v0 = vpop.f32.mrf.mxu0  ;;  %v1035_v1 = vpop.f32.mrf.mxu1 }
 0x19b   : > { %1124 = vst.msk [vmem:[%s2114_s12 + $0x1d8] sm:$0xff] %vm1064_vm0, %v721_v62  ;;  %1188 = vst.msk [vmem:[%s2114_s12 + $0x3d8] sm:$0xff] %vm1064_vm0, %v1041_v63  ;;  %v716_v2 = vadd.f32 %v2109_v16, %v715_v0  ;;  %v1036_v3 = vadd.f32 %v2109_v16, %v1035_v1 }
 0x19c   : > { %v1555_v4 = vpop.f32.mrf.mxu0  ;;  %v1651_v5 = vpop.f32.mrf.mxu1 }
 0x19d   : > { %1123 = vst.msk [vmem:[%s2114_s12 + $0x1d0] sm:$0xff] %vm1064_vm0, %v716_v2  ;;  %1187 = vst.msk [vmem:[%s2114_s12 + $0x3d0] sm:$0xff] %vm1064_vm0, %v1036_v3  ;;  %v731_v6 = vadd.f32 %v1555_v4, %v2109_v16  ;;  %v1051_v7 = vadd.f32 %v1651_v5, %v2109_v16 }
 0x19e   : > { %v725_v8 = vpop.f32.mrf.mxu0  ;;  %v1045_v9 = vpop.f32.mrf.mxu1 }
 0x19f   : > { %1126 = vst.msk [vmem:[%s2114_s12 + $0x1e8] sm:$0xff] %vm1064_vm0, %v731_v6  ;;  %1190 = vst.msk [vmem:[%s2114_s12 + $0x3e8] sm:$0xff] %vm1064_vm0, %v1051_v7  ;;  %v726_v10 = vadd.f32 %v2109_v16, %v725_v8  ;;  %v1046_v11 = vadd.f32 %v2109_v16, %v1045_v9 }
 0x1a0   : > { %v1558_v12 = vpop.f32.mrf.mxu0  ;;  %v1654_v13 = vpop.f32.mrf.mxu1 }
 0x1a1   : > { %1125 = vst.msk [vmem:[%s2114_s12 + $0x1e0] sm:$0xff] %vm1064_vm0, %v726_v10  ;;  %1189 = vst.msk [vmem:[%s2114_s12 + $0x3e0] sm:$0xff] %vm1064_vm0, %v1046_v11  ;;  %v741_v14 = vadd.f32 %v1558_v12, %v2109_v16  ;;  %v1061_v15 = vadd.f32 %v1654_v13, %v2109_v16 }
 0x1a2   : > { %v735_v17 = vpop.f32.mrf.mxu0  ;;  %v1055_v18 = vpop.f32.mrf.mxu1 }
 0x1a3   : > { %1128 = vst.msk [vmem:[%s2114_s12 + $0x1f8] sm:$0xff] %vm1064_vm0, %v741_v14  ;;  %1192 = vst.msk [vmem:[%s2114_s12 + $0x3f8] sm:$0xff] %vm1064_vm0, %v1061_v15  ;;  %v736_v19 = vadd.f32 %v2109_v16, %v735_v17  ;;  %v1056_v20 = vadd.f32 %v2109_v16, %v1055_v18 }
 0x1a5   : > { %1127 = vst.msk [vmem:[%s2114_s12 + $0x1f0] sm:$0xff] %vm1064_vm0, %v736_v19  ;;  %1191 = vst.msk [vmem:[%s2114_s12 + $0x3f0] sm:$0xff] %vm1064_vm0, %v1056_v20 }
 0x1a6 PF: > { %p14_p7 = scmp.ge.s32.totalorder %s1904_s23, 4   ;;  %s2529_s12 = smov %s1823_s13 }
 0x1a7   : > { %s2530_s13 = smov %s1827_s14  ;;  %s2531_s14 = smov %s1924_s4 }
 0x1a8   : > { %s2532_s15 = smov %s1904_s23  ;;  %16 = sbr.rel (!%p14_p7) target bundleno = 4 (0x4), region = 76 }
 0x1ad   :  { %1215 = vsyncpa [#allocation3], 1 }
 0x1ae   :  { %1217 = vsyncpa [#allocation3 + $0x1], 1 }
 0x1af   :  { %1218 = vsyncpa [#allocation5], 1 }

</bundles_post_ra>
